<compile_context>
chip_gen: v6e
topology: v6e:2x2x1
jax: 0.10.0
libtpu: 0.0.40
codegen_flags: <defaults>
</compile_context>

<pallas_src>
import functools

import jax
import jax.numpy as jnp
import numpy as np
from jax.experimental import pallas as pl
from jax.experimental.pallas import tpu as pltpu


# --------------------- pltpu.roll convention probe ---------------------

def _roll_probe_kernel(x_ref, o_ref):
    o_ref[...] = pltpu.roll(x_ref[...], 1, axis=0)


@functools.lru_cache(maxsize=None)
def _roll_shifts_to_higher_rows() -> bool:
    """One-time hardware probe of pltpu.roll's rotation convention.

    Returns True when pltpu.roll(x, 1, axis=0) matches jnp.roll (row i of the
    result holds row i-1 of the input).  The wrapper orders the dy weight
    bands / edge masks to match whichever convention the backend implements.
    Must be called once *outside* of tracing (done in __main__) so the cached
    Python bool is available when the jitted wrapper traces.
    """
    x = np.arange(8 * 128, dtype=np.float32).reshape(8, 128)
    y = pl.pallas_call(
        _roll_probe_kernel,
        out_shape=jax.ShapeDtypeStruct((8, 128), jnp.float32),
    )(jnp.asarray(x))
    return bool(np.allclose(np.asarray(y)[1], x[0]))


# ----------------------------- kernel body -----------------------------

def make_convblock_kernel(has_downsample):
    """Kernel works on a [M, W*C] lane-dense slab holding n_blk whole images
    (M = n_blk*H).  Convs are banded-weight MXU matmuls (bf16 operands, f32
    accumulate); dy row shifts are XLU rolls masked at per-image boundaries."""

    def conv_stage(a, band_ref, m0, m1):
        # a: [M, K] f32 slab.  band_ref: [3, K, W*Cout] bf16 (dy taps, ordered
        # by the wrapper to match the roll convention).  m0/m1: [M, 1] masks
        # zeroing rows that wrapped across an image boundary.
        m_rows = a.shape[0]
        r0 = pltpu.roll(a, 1, axis=0) * m0                  # neighbouring row
        r1 = pltpu.roll(a, m_rows - 1, axis=0) * m1         # opposite neighbour
        bf = jnp.bfloat16
        return (jnp.dot(r0.astype(bf), band_ref[0], preferred_element_type=jnp.float32)
                + jnp.dot(a.astype(bf), band_ref[1], preferred_element_type=jnp.float32)
                + jnp.dot(r1.astype(bf), band_ref[2], preferred_element_type=jnp.float32))

    def kernel(*refs):
        if has_downsample:
            (x_ref, bn14_ref, bn23_ref, edge_ref,
             b1_ref, b2_ref, b3_ref, bd_ref, o_ref) = refs
        else:
            (x_ref, bn14_ref, bn23_ref, edge_ref,
             b1_ref, b2_ref, b3_ref, o_ref) = refs

        x = x_ref[...]                       # [M, W*CinP] f32
        bn14 = bn14_ref[...]                 # [4, W*CinP]  (s1, b1, s4, b4)
        bn23 = bn23_ref[...]                 # [4, W*Cout]  (s2, b2, s3, b3)
        m0 = edge_ref[:, 0:1]                # [M, 1] roll boundary masks
        m1 = edge_ref[:, 1:2]

        # stage 1: bn1 -> relu -> conv1   (writes channels [0, C1) of the slab)
        a1 = jnp.maximum(x * bn14[0:1] + bn14[1:2], 0.0)
        acc = conv_stage(a1, b1_ref, m0, m1)                 # [M, W*Cout]

        # stage 2: bn2 -> relu -> conv2   (reads [0,C1), writes [C1, C1+C2))
        a2 = jnp.maximum(acc * bn23[0:1] + bn23[1:2], 0.0)
        acc = acc + conv_stage(a2, b2_ref, m0, m1)

        # stage 3: bn3 -> relu -> conv3   (reads [C1,C1+C2), writes [C1+C2, Cout))
        a3 = jnp.maximum(acc * bn23[2:3] + bn23[3:4], 0.0)
        acc = acc + conv_stage(a3, b3_ref, m0, m1)

        # residual path
        if has_downsample:
            a4 = jnp.maximum(x * bn14[2:3] + bn14[3:4], 0.0)  # bn4 -> relu
            acc = acc + jnp.dot(a4.astype(jnp.bfloat16), bd_ref[...],
                                preferred_element_type=jnp.float32)
        else:
            acc = acc + x                                     # Cin == Cout

        o_ref[...] = acc.astype(o_ref.dtype)                  # 128-lane-dense store

    return kernel


# ----------------------- weight / param packing -----------------------

def _make_band_weights(wt, W, cin_blk, cin_off, cout_blk, cout_off):
    """wt: [3,3,cin,cout] HWIO conv weight -> [3, W*cin_blk, W*cout_blk] banded
    matrices (one per dy).  The 3 dx taps, zero-padding in W, and the channel
    placement inside the output slab are folded into the band."""
    cin, cout = wt.shape[2], wt.shape[3]
    w_in = jnp.arange(W)[:, None]
    w_out = jnp.arange(W)[None, :]
    dx = w_in - w_out + 1                                   # [W, W]
    valid = ((dx >= 0) & (dx < 3)).astype(wt.dtype)
    bands = []
    for dy in range(3):
        taps = wt[dy]                                       # [3, cin, cout]
        g = jnp.take(taps, jnp.clip(dx, 0, 2), axis=0)      # [W, W, cin, cout]
        g = g * valid[:, :, None, None]
        B = jnp.zeros((W, cin_blk, W, cout_blk), wt.dtype)
        B = B.at[:, cin_off:cin_off + cin, :, cout_off:cout_off + cout].set(
            jnp.transpose(g, (0, 2, 1, 3)))
        bands.append(B.reshape(W * cin_blk, W * cout_blk))
    return jnp.stack(bands)


def _tile_lane(vec, W, c_blk, c_off):
    """Per-channel vector -> lane-dense [W*c_blk] row (channels at offset c_off)."""
    full = jnp.zeros((c_blk,), vec.dtype).at[c_off:c_off + vec.shape[0]].set(vec)
    return jnp.tile(full, W)


def _choose_n_blk(N, H, target_rows=256):
    """Images per grid step: fill the MXU M dim (~256 rows, item-8 vreg cap)
    while keeping >= 2 grid steps when N allows it (both v7x TensorCores);
    n_blk must divide N."""
    n_blk = max(1, min(N, target_rows // max(H, 1)))
    while n_blk > 1 and -(-N // n_blk) < 2:
        n_blk //= 2
    while N % n_blk:
        n_blk -= 1
    return n_blk


# ----------------------------- wrapper -----------------------------

def conv_block_pallas(x_nchw, params, in_planes, out_planes, n_blk=None):
    """x_nchw: [N, Cin, H, W] float32. Returns [N, out_planes, H, W]."""
    N, Cin, H, W = x_nchw.shape
    assert out_planes % 4 == 0, "ConvBlock requires out_planes divisible by 4"
    C1, C2 = out_planes // 2, out_planes // 4
    Cout = C1 + 2 * C2
    has_downsample = (in_planes != out_planes)
    if not has_downsample:
        assert Cin == Cout, "identity residual needs in_planes == out_planes"

    # Pad Cin so the input slab is a multiple of 128 lanes (unmasked loads,
    # full stage-1 K dim).  Only on the downsample path: the identity residual
    # needs the x slab to coincide exactly with the output slab.
    LANE = 128
    Cin_p = Cin
    if has_downsample and (W * Cin) % LANE != 0 and LANE % W == 0:
        Cin_p = (-(-(W * Cin) // LANE) * LANE) // W
    WCin, WCout = W * Cin_p, W * Cout

    if n_blk is None:
        n_blk = _choose_n_blk(N, H)
    assert N % n_blk == 0
    M = n_blk * H
    steps = N // n_blk
    assert M % 8 == 0 or steps == 1, "rows per grid step must be a multiple of 8"

    roll_fwd = _roll_shifts_to_higher_rows()   # cached Python bool (probed in main)

    # NCHW -> lane-dense [N*H, W*Cin_p] slab (channel fastest within each w block).
    x = jnp.transpose(x_nchw, (0, 2, 3, 1))                   # [N, H, W, Cin]
    if Cin_p != Cin:
        x = jnp.pad(x, ((0, 0), (0, 0), (0, 0), (0, Cin_p - Cin)))
    x = x.reshape(N * H, WCin)

    f = lambda p: params[p].reshape(-1)
    bn14 = jnp.stack([_tile_lane(f("s1"), W, Cin_p, 0),
                      _tile_lane(f("b1"), W, Cin_p, 0),
                      _tile_lane(f("s4"), W, Cin_p, 0),
                      _tile_lane(f("b4"), W, Cin_p, 0)])       # [4, W*CinP]
    bn23 = jnp.stack([_tile_lane(f("s2"), W, Cout, 0),
                      _tile_lane(f("b2"), W, Cout, 0),
                      _tile_lane(f("s3"), W, Cout, C1),
                      _tile_lane(f("b3"), W, Cout, C1)])       # [4, W*Cout]

    # Per-image roll-boundary masks, column order matched to the roll convention.
    rows = np.arange(M)
    top_ok = (rows % H != 0).astype(np.float32)        # a row above exists
    bot_ok = (rows % H != H - 1).astype(np.float32)    # a row below exists
    edge = np.stack([top_ok, bot_ok] if roll_fwd else [bot_ok, top_ok], axis=1)
    edge = jnp.asarray(edge)                                   # [M, 2]

    # Banded conv weights in bf16 (in a real model these would be precomputed once).
    def pack_band(w, cin_blk, cin_off, cout_off):
        b = _make_band_weights(w, W, cin_blk, cin_off, Cout, cout_off)
        if not roll_fwd:
            b = b[::-1]                                        # swap dy0 / dy2
        return b.astype(jnp.bfloat16)

    B1 = pack_band(params["w1"], Cin_p, 0, 0)
    B2 = pack_band(params["w2"], Cout, 0, C1)
    B3 = pack_band(params["w3"], Cout, C1, C1 + C2)

    inputs = [x, bn14, bn23, edge, B1, B2, B3]
    if has_downsample:
        wd = params["wd"]                                      # [Cin, Cout]
        Bd = jnp.zeros((W, Cin_p, W, Cout), wd.dtype)
        Bd = Bd.at[:, :Cin, :, :].set(
            jnp.eye(W, dtype=wd.dtype)[:, None, :, None] * wd[None, :, None, :])
        inputs.append(Bd.reshape(WCin, WCout).astype(jnp.bfloat16))  # 1x1 conv

    def const_spec(shape):
        nd = len(shape)
        return pl.BlockSpec(shape, lambda i, _nd=nd: (0,) * _nd)

    in_specs = [pl.BlockSpec((M, WCin), lambda i: (i, 0))]
    in_specs += [const_spec(a.shape) for a in inputs[1:]]

    # Advisory cost estimate (banded matmuls + residual matmul; bytes = I/O + weights).
    flops = (2 * N * H * WCout * (3 * WCin + 6 * WCout)
             + (2 * N * H * WCin * WCout if has_downsample else 0))
    band_elems = 3 * WCin * WCout + 6 * WCout * WCout + (WCin * WCout if has_downsample else 0)
    bytes_accessed = (4 * N * H * (WCin + WCout) + 2 * band_elems
                      + 4 * (4 * WCin + 4 * WCout + 2 * M))

    out2d = pl.pallas_call(
        make_convblock_kernel(has_downsample),
        out_shape=jax.ShapeDtypeStruct((N * H, WCout), jnp.float32),
        grid_spec=pltpu.PrefetchScalarGridSpec(
            num_scalar_prefetch=0,
            grid=(steps,),
            in_specs=in_specs,
            out_specs=pl.BlockSpec((M, WCout), lambda i: (i, 0)),
        ),
        compiler_params=pltpu.CompilerParams(
            dimension_semantics=("parallel",),          # both TCs on v7x
            vmem_limit_bytes=32 * 1024 * 1024),         # safe on v5e/v6e/v7x
        cost_estimate=pl.CostEstimate(flops=int(flops), transcendentals=0,
                                      bytes_accessed=int(bytes_accessed)),
    )(*inputs)

    out = out2d.reshape(N, H, W, Cout)
    return jnp.transpose(out, (0, 3, 1, 2))                    # NHWC -> NCHW


# ---------------- deterministic parameter construction ----------------

def make_params(key, in_planes, out_planes):
    C1, C2 = out_planes // 2, out_planes // 4
    eps = 1e-5
    keys = jax.random.split(key, 20)

    def bn_affine(k_idx, c):
        gamma = 1.0 + 0.1 * jax.random.normal(keys[k_idx], (c,), jnp.float32)
        beta = 0.1 * jax.random.normal(keys[k_idx + 1], (c,), jnp.float32)
        mean = 0.1 * jax.random.normal(keys[k_idx + 2], (c,), jnp.float32)
        var = 1.0 + 0.1 * jax.random.uniform(keys[k_idx + 3], (c,), jnp.float32)
        scale = gamma / jnp.sqrt(var + eps)
        shift = beta - mean * scale
        return scale.reshape(1, 1, 1, c), shift.reshape(1, 1, 1, c)

    s1, b1 = bn_affine(0, in_planes)
    s2, b2 = bn_affine(4, C1)
    s3, b3 = bn_affine(8, C2)
    s4, b4 = bn_affine(12, in_planes)

    def conv_w(k_idx, cin, cout):   # HWIO, kaiming-ish scale
        fan_in = cin * 9
        return jax.random.normal(keys[k_idx], (3, 3, cin, cout),
                                 jnp.float32) * (1.0 / np.sqrt(fan_in))

    w1 = conv_w(16, in_planes, C1)
    w2 = conv_w(17, C1, C2)
    w3 = conv_w(18, C2, C2)
    wd = jax.random.normal(keys[19], (in_planes, out_planes),
                           jnp.float32) * (1.0 / np.sqrt(in_planes))  # 1x1 conv

    return dict(s1=s1, b1=b1, w1=w1, s2=s2, b2=b2, w2=w2,
                s3=s3, b3=b3, w3=w3, s4=s4, b4=b4, wd=wd)


# ---------------- pure-JAX reference for correctness check ----------------

def conv_block_reference(x_nchw, params, in_planes, out_planes):
    x = jnp.transpose(x_nchw, (0, 2, 3, 1))

    def bn_relu(v, s, b):
        return jnp.maximum(v * s + b, 0.0)

    def conv(v, w):
        return jax.lax.conv_general_dilated(
            v, w, window_strides=(1, 1), padding="SAME",
            dimension_numbers=("NHWC", "HWIO", "NHWC"))

    out1 = conv(bn_relu(x, params["s1"], params["b1"]), params["w1"])
    out2 = conv(bn_relu(out1, params["s2"], params["b2"]), params["w2"])
    out3 = conv(bn_relu(out2, params["s3"], params["b3"]), params["w3"])
    out = jnp.concatenate([out1, out2, out3], axis=-1)
    if in_planes != out_planes:
        res = jnp.einsum("nhwc,co->nhwo",
                         bn_relu(x, params["s4"], params["b4"]), params["wd"])
    else:
        res = x
    return jnp.transpose(out + res, (0, 3, 1, 2))


if __name__ == "__main__":
    # Resolve pltpu.roll's rotation convention once, eagerly, before any tracing.
    _roll_shifts_to_higher_rows()

    configs = [(2, 4, 8, 16, 16),    # downsample path; Cin padded 4->8 (128 lanes)
               (2, 8, 8, 16, 16),    # identity-residual path
               (8, 4, 8, 16, 16)]    # batched path: n_blk=4 images per grid step

    key = jax.random.PRNGKey(0)
    for (N, in_planes, out_planes, H, W) in configs:
        key, kx, kp = jax.random.split(key, 3)
        x = jax.random.normal(kx, (N, in_planes, H, W), jnp.float32)
        params = make_params(kp, in_planes, out_planes)

        fn = jax.jit(functools.partial(conv_block_pallas,
                                       in_planes=in_planes, out_planes=out_planes))
        out = fn(x, params)
        jax.block_until_ready(out)

        ref = conv_block_reference(x, params, in_planes, out_planes)
        np.testing.assert_allclose(np.asarray(out), np.asarray(ref),
                                   rtol=2e-2, atol=2e-2)

    print("KERNEL_OK")
</pallas_src>

<mosaic_0001>
module attributes {stable_mosaic.version = 11 : i64} {
  func.func @_roll_probe_kernel(%arg0: memref<8x128xf32, #tpu.memory_space<vmem>>, %arg1: memref<8x128xf32, #tpu.memory_space<vmem>>) attributes {dimension_semantics = [], scalar_prefetch = 0 : i64, scratch_operands = 0 : i64, tpu.core_type = #tpu.core_type<tc>} {
    %c0 = arith.constant 0 : index
    %c0_0 = arith.constant 0 : index
    %0 = vector.load %arg0[%c0, %c0_0] : memref<8x128xf32, #tpu.memory_space<vmem>>, vector<8x128xf32>
    %c1_i32 = arith.constant 1 : i32
    %1 = tpu.dynamic_rotate %0 by %c1_i32 dim 0 : vector<8x128xf32>, i32 -> vector<8x128xf32>
    %c0_1 = arith.constant 0 : index
    %c0_2 = arith.constant 0 : index
    %2 = vector.load %arg1[%c0_1, %c0_2] : memref<8x128xf32, #tpu.memory_space<vmem>>, vector<8x128xf32>
    tpu.vector_store %arg1[%c0_1, %c0_2], %1 {strides = array<i32>} : memref<8x128xf32, #tpu.memory_space<vmem>>, vector<8x128xf32>,
    return
  }
}

</mosaic_0001>

<bundles_post_ra>
// kernel: tpu_custom_call.1
= control target key start
LH: loop header
LB: loop body
LE: loop exit
PB: predicated region body
PF: predicated region fallthrough
CT: control target
= control target key end

     0   :  { %6 = vsyncpa [#allocation3], 0  ;;  %s103_s0 = inlined_call_operand.hbm [shape: f32[8,128], index: 0, kind: input, shape index: {}]   ;;  %s104_s1 = inlined_call_operand.hbm [shape: f32[8,128], index: 1, kind: output, shape index: {}]  }
   0x1   :  { %7 = vsyncpa [#allocation4], 0  ;;  %s85_s6 = smov [#allocation2]  }
   0x2   :  { %s14_s7 = sshll.u32 %s85_s6, 4  ;;  %s15_s7 = int_to_ptr.vmem [resolvable:$true] %s14_s7 }
   0x3   :  { %s49_s8 = scalar_lea.vmem %s15_s7, 128  ;;  %p54_p1 = scmp.lt.s32.totalorder %s15_s7, %s15_s7 }
   0x4   :  { %p50_p0 = scmp.ne.s32.totalorder %s15_s7, %s49_s8  ;;  %p55_p2 = scmp.lt.s32.totalorder %s49_s8, %s49_s8 }
   0x6   :  { %p56_p3 = por %p55_p2, %p54_p1 }
   0x8   :  { %p57_p4 = pnand %p56_p3, %p50_p0 }
   0xa   :  { %60 = shalt.err (!%p57_p4)
}
   0xb   :  { %17 = dma.hbm_to_vmem [thread:$0]  %s103_s0, 128, %s15_s7, [#allocation3]  }
   0xc   :  { %81 = dma.done.wait [#allocation3], 128  }
   0xd   :  { %82 = vsyncadd [#allocation3], 4294967168  ;;  %s86_s11 = smov [#allocation5]   ;;  %v21_v0 = vld [vmem:[#allocation2] sm:$0xff] }
   0xe   :  { %s30_s12 = sshll.u32 %s86_s11, 4  ;;  %v22_v1 = vrot.slane %v21_v0, 7  ;;  %s31_s12 = int_to_ptr.vmem [resolvable:$true] %s30_s12 }
   0xf   :  { %s61_s13 = scalar_lea.vmem %s31_s12, 128  ;;  %p66_p6 = scmp.lt.s32.totalorder %s31_s12, %s31_s12 }
  0x10   :  { %23 = vst [vmem:[#allocation5] sm:$0xff] %v22_v1  ;;  %p62_p5 = scmp.ne.s32.totalorder %s31_s12, %s61_s13  ;;  %p67_p7 = scmp.lt.s32.totalorder %s61_s13, %s61_s13 }
  0x12   :  { %p68_p8 = por %p67_p7, %p66_p6 }
  0x14   :  { %p69_p9 = pnand %p68_p8, %p62_p5 }
  0x16   :  { %72 = shalt.err (!%p69_p9)
}
  0x17   :  { %33 = dma.vmem_to_hbm [thread:$0]  %s31_s12, 128, %s104_s1, [#allocation4]  }
  0x18   :  { %83 = dma.done.wait [#allocation4], 128  }
  0x19   :  { %84 = vsyncadd [#allocation4], 4294967168 }
  0x1a   :  { %37 = vsyncpa [#allocation3], 1 }
  0x1b   :  { %38 = vsyncpa [#allocation4], 1 }

</bundles_post_ra>
